<compile_context>
chip_gen: v7x
topology: tpu7x:2x2x1
jax: 0.10.0
libtpu: 0.0.40
codegen_flags: <defaults>
</compile_context>

<pallas_src>
import functools

import jax
import jax.numpy as jnp
from jax.experimental import pallas as pl
from jax.experimental.pallas import tpu as pltpu


def _ffm_kernel(x_ref, wbig_ref, wlin_ref, seg_ref, b_ref, o_ref):
    # x tile arrives dense: each 128-lane row packs G = 128//n consecutive batch
    # rows.  Upcast once to f32 (v5e VPU has no bf16 ops; accumulation is f32).
    x2 = x_ref[...].astype(jnp.float32)        # (Rt, 128)
    wbig = wbig_ref[...]                       # (128, 128) = kron(I_G, W_upper), resident
    wlin = wlin_ref[...]                       # (1, 128)   = lin_w tiled G times, resident
    seg = seg_ref[...]                         # (128, G)   = kron(I_G, ones(n,1)), resident
    bias = b_ref[0, 0]                         # scalar, SMEM

    # wx[r, g*n+j] = (x[b,:] @ W_upper)[j] for batch row b = r*G + g  (MXU).
    wx = jnp.dot(x2, wbig, preferred_element_type=jnp.float32)
    # Fused linear + interaction terms (VPU, f32).
    fused = (wx + wlin) * x2
    # Segmented row-sum over each n-lane group on the (idle) MXU -> (Rt, G),
    # i.e. out[r, g] = output of batch row r*G + g.
    o_ref[...] = jnp.dot(fused, seg, preferred_element_type=jnp.float32) + bias


@functools.partial(jax.jit, static_argnames=("tb",))
def ffm_forward(x, w_big, w_lin_big, seg_sum, bias, *, tb=16384):
    """FFM forward.

    x:         (B, n) f32 or bf16 (bf16 halves the HBM traffic of the hot path)
    w_big:     (128, 128) = kron(I_G, W_upper),  G = 128 // n
    w_lin_big: (1, 128)   = linear weights tiled G times
    seg_sum:   (128, G)   = kron(I_G, ones(n, 1))  (segment-sum matrix)
    bias:      (1, 1)
    tb:        batch rows per grid step (review: 8K-32K; multiple of 8*G when tiling)
    """
    B, n = x.shape
    assert 128 % n == 0, "kron packing needs n to divide 128"
    # TODO(synk): general n (128 % n != 0) needs a (B, n)-blocked fallback path.
    G = 128 // n

    if x.dtype not in (jnp.float32, jnp.bfloat16):
        x = x.astype(jnp.float32)

    # Batch rows must be a multiple of G for the free row-major reshape; pad only
    # the (rare) ragged case.
    B_work = pl.cdiv(B, G) * G
    if B_work != B:
        x = jnp.pad(x, ((0, B_work - B), (0, 0)))
    R = B_work // G
    x2 = x.reshape(R, 128)          # pure view: batch now dense on the lane axis

    if B_work <= tb:
        r_tile = R                  # single full-extent block (no (8,128) constraint)
    else:
        assert tb % (8 * G) == 0, "tb must keep the tile sublane-aligned"
        r_tile = tb // G
    grid = (pl.cdiv(R, r_tile),)    # remainder block is masked by Pallas; safe because
                                    # every output row depends only on its own input row.

    itemsize = jnp.dtype(x.dtype).itemsize
    cost = pl.CostEstimate(
        flops=2 * R * 128 * 128 + 2 * R * 128 * G + 3 * R * 128,
        transcendentals=0,
        bytes_accessed=B_work * n * itemsize + 128 * 128 * 4 + 128 * 4
        + 128 * G * 4 + R * G * 4,
    )

    out = pl.pallas_call(
        _ffm_kernel,
        out_shape=jax.ShapeDtypeStruct((R, G), jnp.float32),
        grid=grid,
        in_specs=[
            pl.BlockSpec((r_tile, 128), lambda i: (i, 0)),        # x tile, dense, pipelined
            pl.BlockSpec((128, 128), lambda i: (0, 0)),           # W_big, VMEM-resident
            pl.BlockSpec((1, 128), lambda i: (0, 0)),             # w_lin, VMEM-resident
            pl.BlockSpec((128, G), lambda i: (0, 0)),             # segment-sum, resident
            pl.BlockSpec(memory_space=pltpu.MemorySpace.SMEM),    # bias scalar
        ],
        out_specs=pl.BlockSpec((r_tile, G), lambda i: (i, 0)),    # dense output block
        compiler_params=pltpu.CompilerParams(
            dimension_semantics=("parallel",),         # megacore sharding when grid >= 2
            vmem_limit_bytes=32 * 1024 * 1024,         # explicit headroom (v5e default 16 MiB)
        ),
        cost_estimate=cost,
    )(x2, w_big, w_lin_big, seg_sum, bias)

    return out.reshape(B_work, 1)[:B]


def build_ffm_params(key, n, k, f):
    """Deterministic parameter init mirroring the nn.Module __init__ shapes."""
    k_lin_w, k_lin_b, k_v = jax.random.split(key, 3)
    lin_w = jax.random.normal(k_lin_w, (1, n), dtype=jnp.float32) * 0.1   # nn.Linear weight
    lin_b = jax.random.normal(k_lin_b, (1,), dtype=jnp.float32) * 0.1     # nn.Linear bias
    v = jax.random.normal(k_v, (n, f, k), dtype=jnp.float32)              # latent vectors
    return lin_w, lin_b, v


def precompute_pairwise_weights(v, field_ids):
    """W_upper[i, j] = <v[i, field(j)], v[j, field(i)]> for i < j, else 0."""
    A = v[:, field_ids, :]                       # (n, n, k): A[i, j] = v[i, field(j)]
    Bm = jnp.transpose(A, (1, 0, 2))             # (n, n, k): B[i, j] = v[j, field(i)]
    W = jnp.sum(A * Bm, axis=-1)                 # (n, n)
    return jnp.triu(W, k=1)                      # strictly upper triangular


def pack_ffm_params(w_upper, lin_w, lin_b):
    """Parameter-only packing for the lane-dense kernel layout (glue, runs once)."""
    n = w_upper.shape[0]
    assert 128 % n == 0, "kron packing needs n to divide 128"
    G = 128 // n
    eye_g = jnp.eye(G, dtype=jnp.float32)
    w_big = jnp.kron(eye_g, w_upper.astype(jnp.float32))                       # (128, 128)
    w_lin_big = jnp.tile(lin_w.reshape(1, n).astype(jnp.float32), (1, G))      # (1, 128)
    seg_sum = jnp.kron(eye_g, jnp.ones((n, 1), jnp.float32))                   # (128, G)
    bias = lin_b.reshape(1, 1).astype(jnp.float32)                             # (1, 1)
    return w_big, w_lin_big, seg_sum, bias


def ffm_reference(x, lin_w, lin_b, v, field_ids):
    """Plain-JAX reference matching the PyTorch double loop."""
    B, n = x.shape
    linear = x @ lin_w.T + lin_b                 # (B, 1)
    inter = jnp.zeros((B, 1), dtype=jnp.float32)
    for i in range(n):
        for j in range(i + 1, n):
            w_ij = jnp.sum(v[i, field_ids[j]] * v[j, field_ids[i]])
            inter = inter + w_ij * (x[:, i] * x[:, j])[:, None]
    return linear + inter


if __name__ == "__main__":
    # Small shapes: n features, k latent dim, f fields; B exercises both the
    # single-block path and (with tb=128) the multi-step masked-remainder path.
    B, n, k, f = 200, 16, 4, 4

    key = jax.random.PRNGKey(0)
    k_params, k_x = jax.random.split(key)
    lin_w, lin_b, v = build_ffm_params(k_params, n, k, f)

    # feature2fielddict: feature index -> field index (deterministic synthetic map)
    field_ids = jnp.array([i % f for i in range(n)], dtype=jnp.int32)
    x = jax.random.normal(k_x, (B, n), dtype=jnp.float32)

    w_upper = precompute_pairwise_weights(v, field_ids)          # (n, n), parameter-only
    w_big, w_lin_big, seg_sum, bias = pack_ffm_params(w_upper, lin_w, lin_b)

    ref = ffm_reference(x, lin_w, lin_b, v, field_ids)

    # 1) f32 input, default (large) batch tile -> single full-extent block.
    out = jax.block_until_ready(ffm_forward(x, w_big, w_lin_big, seg_sum, bias))
    assert out.shape == (B, 1), out.shape
    assert jnp.allclose(out, ref, atol=2e-3, rtol=2e-3), (
        f"max abs err = {jnp.max(jnp.abs(out - ref))}"
    )

    # 2) f32 input, small tile -> multi-step pipelined grid + masked remainder block.
    out_t = jax.block_until_ready(
        ffm_forward(x, w_big, w_lin_big, seg_sum, bias, tb=128)
    )
    assert jnp.allclose(out_t, ref, atol=2e-3, rtol=2e-3), (
        f"max abs err (tiled) = {jnp.max(jnp.abs(out_t - ref))}"
    )

    # 3) bf16 input (halves x HBM traffic); compare against the reference run on
    #    the same bf16-quantized activations (kernel accumulates in f32).
    x_bf16 = x.astype(jnp.bfloat16)
    out_b = jax.block_until_ready(
        ffm_forward(x_bf16, w_big, w_lin_big, seg_sum, bias, tb=128)
    )
    ref_b = ffm_reference(x_bf16.astype(jnp.float32), lin_w, lin_b, v, field_ids)
    assert jnp.allclose(out_b, ref_b, atol=2e-3, rtol=2e-3), (
        f"max abs err (bf16) = {jnp.max(jnp.abs(out_b - ref_b))}"
    )

    print("KERNEL_OK")
</pallas_src>

<mosaic_0001>
module attributes {stable_mosaic.version = 11 : i64} {
  func.func @_ffm_kernel(%arg0: i32, %arg1: memref<25x128xf32, #tpu.memory_space<vmem>>, %arg2: memref<128x128xf32, #tpu.memory_space<vmem>>, %arg3: memref<1x128xf32, #tpu.memory_space<vmem>>, %arg4: memref<128x8xf32, #tpu.memory_space<vmem>>, %arg5: memref<1x1xf32, #tpu.memory_space<smem>>, %arg6: memref<25x8xf32, #tpu.memory_space<vmem>>) attributes {dimension_semantics = [#tpu.dimension_semantics<parallel>], iteration_bounds = array<i64: 1>, scalar_prefetch = 0 : i64, scratch_operands = 0 : i64, tpu.core_type = #tpu.core_type<tc>, window_params = [{transform_indices = @transform_0, window_bounds = array<i64: 25, 128>}, {pipeline_mode = #tpu.pipeline_mode<synchronous>, transform_indices = @transform_1, window_bounds = array<i64: 128, 128>}, {pipeline_mode = #tpu.pipeline_mode<synchronous>, transform_indices = @transform_2, window_bounds = array<i64: 1, 128>}, {pipeline_mode = #tpu.pipeline_mode<synchronous>, transform_indices = @transform_3, window_bounds = array<i64: 128, 8>}, {transform_indices = @transform_4, window_bounds = array<i64: 1, 1>}, {transform_indices = @transform_5, window_bounds = array<i64: 25, 8>}]} {
    %c0 = arith.constant 0 : index
    %c0_0 = arith.constant 0 : index
    %0 = vector.load %arg1[%c0, %c0_0] : memref<25x128xf32, #tpu.memory_space<vmem>>, vector<25x128xf32>
    %c0_1 = arith.constant 0 : index
    %c0_2 = arith.constant 0 : index
    %1 = vector.load %arg2[%c0_1, %c0_2] : memref<128x128xf32, #tpu.memory_space<vmem>>, vector<128x128xf32>
    %c0_3 = arith.constant 0 : index
    %c0_4 = arith.constant 0 : index
    %2 = vector.load %arg3[%c0_3, %c0_4] : memref<1x128xf32, #tpu.memory_space<vmem>>, vector<1x128xf32>
    %c0_5 = arith.constant 0 : index
    %c0_6 = arith.constant 0 : index
    %3 = vector.load %arg4[%c0_5, %c0_6] : memref<128x8xf32, #tpu.memory_space<vmem>>, vector<128x8xf32>
    %c0_7 = arith.constant 0 : index
    %c0_8 = arith.constant 0 : index
    %4 = memref.load %arg5[%c0_7, %c0_8] : memref<1x1xf32, #tpu.memory_space<smem>>
    %cst = arith.constant dense<0.000000e+00> : vector<25x128xf32>
    %5 = tpu.matmul %0, %1, %cst {dimension_numbers = #tpu.dot_dimension_numbers<[1], [0], [0], [1], [0, 0, 1, 1], [], []>} : vector<25x128xf32>, vector<128x128xf32>, vector<25x128xf32> -> vector<25x128xf32>
    %6 = vector.broadcast %2 : vector<1x128xf32> to vector<25x128xf32>
    %7 = arith.addf %5, %6 : vector<25x128xf32>
    %8 = arith.mulf %7, %0 : vector<25x128xf32>
    %cst_9 = arith.constant dense<0.000000e+00> : vector<25x8xf32>
    %9 = tpu.matmul %8, %3, %cst_9 {dimension_numbers = #tpu.dot_dimension_numbers<[1], [0], [0], [1], [0, 0, 1, 1], [], []>} : vector<25x128xf32>, vector<128x8xf32>, vector<25x8xf32> -> vector<25x8xf32>
    %10 = vector.broadcast %4 : f32 to vector<25x8xf32>
    %11 = arith.addf %9, %10 : vector<25x8xf32>
    %c0_10 = arith.constant 0 : index
    %c0_11 = arith.constant 0 : index
    %12 = vector.load %arg6[%c0_10, %c0_11] : memref<25x8xf32, #tpu.memory_space<vmem>>, vector<25x8xf32>
    tpu.vector_store %arg6[%c0_10, %c0_11], %11 {strides = array<i32>} : memref<25x8xf32, #tpu.memory_space<vmem>>, vector<25x8xf32>,
    return
  }
  func.func @transform_0(%arg0: i32) -> (i32, i32) {
    %c0_i32 = arith.constant 0 : i32
    %c0_i32_0 = arith.constant 0 : i32
    return %arg0, %c0_i32 : i32, i32
  }
  func.func @transform_1(%arg0: i32) -> (i32, i32) {
    %c0_i32 = arith.constant 0 : i32
    %c0_i32_0 = arith.constant 0 : i32
    %c0_i32_1 = arith.constant 0 : i32
    return %c0_i32, %c0_i32_0 : i32, i32
  }
  func.func @transform_2(%arg0: i32) -> (i32, i32) {
    %c0_i32 = arith.constant 0 : i32
    %c0_i32_0 = arith.constant 0 : i32
    %c0_i32_1 = arith.constant 0 : i32
    return %c0_i32, %c0_i32_0 : i32, i32
  }
  func.func @transform_3(%arg0: i32) -> (i32, i32) {
    %c0_i32 = arith.constant 0 : i32
    %c0_i32_0 = arith.constant 0 : i32
    %c0_i32_1 = arith.constant 0 : i32
    return %c0_i32, %c0_i32_0 : i32, i32
  }
  func.func @transform_4(%arg0: i32) -> (i32, i32) {
    %c0_i32 = arith.constant 0 : i32
    %c0_i32_0 = arith.constant 0 : i32
    %c0_i32_1 = arith.constant 0 : i32
    return %c0_i32, %c0_i32_0 : i32, i32
  }
  func.func @transform_5(%arg0: i32) -> (i32, i32) {
    %c0_i32 = arith.constant 0 : i32
    %c0_i32_0 = arith.constant 0 : i32
    return %arg0, %c0_i32 : i32, i32
  }
}

</mosaic_0001>

<bundles_post_ra>
// kernel: ffm_forward.1
= control target key start
LH: loop header
LB: loop body
LE: loop exit
PB: predicated region body
PF: predicated region fallthrough
CT: control target
= control target key end

     0   :  { %vm240_vm0 = vcmask 64512   ;;  %vm244_vm1 = vcmask 57344   ;;  %s591_s1 = inlined_call_operand.vmem [shape: f32[128,128], index: 1, kind: input, shape index: {}]   ;;  %s592_s0 = inlined_call_operand.vmem [shape: f32[25,128], index: 0, kind: input, shape index: {}]   ;;  %s593_s3 = inlined_call_operand.vmem [shape: f32[128,8], index: 3, kind: input, shape index: {}]   ;;  %s594_s2 = inlined_call_operand.vmem [shape: f32[1,128], index: 2, kind: input, shape index: {}]   ;;  %s595_s4 = inlined_call_operand.<no memory space> [shape: f32[1,1], index: 4, kind: input, shape index: {}]   ;;  %s596_s5 = inlined_call_operand.vmem [shape: f32[25,8], index: 5, kind: output, shape index: {}]  }
   0x1   :  { %v25_v0 = vld [vmem:[%s591_s1] sm:$0xff]  ;;  %v26_v1 = vld [vmem:[%s591_s1 + $0x8] sm:$0xff]  ;;  %v27_v2 = vld [vmem:[%s591_s1 + $0x10] sm:$0xff] }
   0x2   :  { %v367_v3 = vpack.c.bf16 %v26_v1, %v25_v0  ;;  %v28_v4 = vld [vmem:[%s591_s1 + $0x18] sm:$0xff]  ;;  %v29_v6 = vld [vmem:[%s591_s1 + $0x20] sm:$0xff]  ;;  %v30_v7 = vld [vmem:[%s591_s1 + $0x28] sm:$0xff]  ;;  %v154_v1 = vstv %s595_s4 }
   0x3   :  { %v371_v5 = vpack.c.bf16 %v28_v4, %v27_v2  ;;  %v375_v8 = vpack.c.bf16 %v30_v7, %v29_v6  ;;  %v482_v9 = vld [vmem:[%s592_s0] sm:$0xff]  ;;  %v31_v10 = vld [vmem:[%s591_s1 + $0x30] sm:$0xff]  ;;  %v32_v11 = vld [vmem:[%s591_s1 + $0x38] sm:$0xff] }
   0x4   :  { %368 = vmatprep.subr.bf16.mxu0 %v367_v3  ;;  %323 = vmatprep.mubr.f32.mxu0 %v482_v9  ;;  %v42_v12 = vld [vmem:[%s593_s3] sm:$0xff]  ;;  %v43_v13 = vld [vmem:[%s593_s3 + $0x8] sm:$0xff]  ;;  %v44_v14 = vld [vmem:[%s593_s3 + $0x10] sm:$0xff]  ;;  %v379_v18 = vpack.c.bf16 %v32_v11, %v31_v10 }
   0x5   :  { %370 = vmatpush3.bf16.msra.mxu0 %v367_v3  ;;  %v45_v15 = vld [vmem:[%s593_s3 + $0x18] sm:$0xff]  ;;  %v399_v16 = vpack.c.bf16 %v43_v13, %v42_v12  ;;  %v46_v19 = vld [vmem:[%s593_s3 + $0x20] sm:$0xff]  ;;  %v47_v20 = vld [vmem:[%s593_s3 + $0x28] sm:$0xff] }
   0x6   :  { %372 = vmatprep.subr.bf16.mxu0 %v371_v5  ;;  %v403_v17 = vpack.c.bf16 %v45_v15, %v44_v14  ;;  %v33_v21 = vld [vmem:[%s591_s1 + $0x40] sm:$0xff]  ;;  %v34_v22 = vld [vmem:[%s591_s1 + $0x48] sm:$0xff]  ;;  %v407_v23 = vpack.c.bf16 %v47_v20, %v46_v19  ;;  %v48_v25 = vld [vmem:[%s593_s3 + $0x30] sm:$0xff] }
   0x7   :  { %400 = vmatprep.subr.bf16.mxu1 %v399_v16  ;;  %v383_v24 = vpack.c.bf16 %v34_v22, %v33_v21  ;;  %v49_v26 = vld [vmem:[%s593_s3 + $0x38] sm:$0xff]  ;;  %v35_v27 = vld [vmem:[%s591_s1 + $0x50] sm:$0xff]  ;;  %v50_v31 = vld [vmem:[%s593_s3 + $0x40] sm:$0xff] }
   0x8   :  { %402 = vmatpush3.bf16.msra.mxu1 %v399_v16  ;;  %v36_v28 = vld [vmem:[%s591_s1 + $0x58] sm:$0xff]  ;;  %v411_v29 = vpack.c.bf16 %v49_v26, %v48_v25  ;;  %v51_v32 = vld [vmem:[%s593_s3 + $0x48] sm:$0xff]  ;;  %v37_v33 = vld [vmem:[%s591_s1 + $0x60] sm:$0xff] }
   0x9   :  { %374 = vmatpush3.bf16.msra.mxu0 %v371_v5  ;;  %404 = vmatprep.subr.bf16.mxu1 %v403_v17  ;;  %v387_v30 = vpack.c.bf16 %v36_v28, %v35_v27  ;;  %v38_v34 = vld [vmem:[%s591_s1 + $0x68] sm:$0xff]  ;;  %v415_v35 = vpack.c.bf16 %v51_v32, %v50_v31  ;;  %v52_v37 = vld [vmem:[%s593_s3 + $0x50] sm:$0xff]  ;;  %v53_v38 = vld [vmem:[%s593_s3 + $0x58] sm:$0xff] }
   0xa   :  { %376 = vmatprep.subr.bf16.mxu0 %v375_v8  ;;  %v391_v36 = vpack.c.bf16 %v38_v34, %v37_v33  ;;  %v39_v39 = vld [vmem:[%s591_s1 + $0x70] sm:$0xff]  ;;  %v40_v40 = vld [vmem:[%s591_s1 + $0x78] sm:$0xff]  ;;  %v419_v41 = vpack.c.bf16 %v53_v38, %v52_v37  ;;  %v54_v43 = vld [vmem:[%s593_s3 + $0x60] sm:$0xff] }
   0xb   :  { %v395_v42 = vpack.c.bf16 %v40_v40, %v39_v39  ;;  %v55_v44 = vld [vmem:[%s593_s3 + $0x68] sm:$0xff]  ;;  %v23_v47 = vld [vmem:[%s592_s0 + $0x10] sm:$0xff]  ;;  %v24_v48 = vld [vmem:[%s592_s0 + $0x18] sm:$0x1] }
   0xc   :  { %406 = vmatpush3.bf16.msra.mxu1 %v403_v17  ;;  %v423_v45 = vpack.c.bf16 %v55_v44, %v54_v43  ;;  %v22_v46 = vld [vmem:[%s592_s0 + $0x8] sm:$0xff]  ;;  %v56_v49 = vld [vmem:[%s593_s3 + $0x70] sm:$0xff]  ;;  %v57_v50 = vld [vmem:[%s593_s3 + $0x78] sm:$0xff] }
   0xd   :  { %378 = vmatpush3.bf16.msra.mxu0 %v375_v8  ;;  %408 = vmatprep.subr.bf16.mxu1 %v407_v23  ;;  %v427_v51 = vpack.c.bf16 %v57_v50, %v56_v49  ;;  %v250_v52 = vld [vmem:[%s594_s2] ss:$0 sm:$0xff] }
   0xe   :  { %380 = vmatprep.subr.bf16.mxu0 %v379_v18 }
  0x10   :  { %410 = vmatpush3.bf16.msra.mxu1 %v407_v23 }
  0x11   :  { %382 = vmatpush3.bf16.msra.mxu0 %v379_v18  ;;  %412 = vmatprep.subr.bf16.mxu1 %v411_v29 }
  0x12   :  { %384 = vmatprep.subr.bf16.mxu0 %v383_v24 }
  0x14   :  { %414 = vmatpush3.bf16.msra.mxu1 %v411_v29 }
  0x15   :  { %386 = vmatpush3.bf16.msra.mxu0 %v383_v24  ;;  %416 = vmatprep.subr.bf16.mxu1 %v415_v35 }
  0x16   :  { %388 = vmatprep.subr.bf16.mxu0 %v387_v30 }
  0x18   :  { %418 = vmatpush3.bf16.msra.mxu1 %v415_v35 }
  0x19   :  { %390 = vmatpush3.bf16.msra.mxu0 %v387_v30  ;;  %420 = vmatprep.subr.bf16.mxu1 %v419_v41 }
  0x1a   :  { %392 = vmatprep.subr.bf16.mxu0 %v391_v36 }
  0x1c   :  { %422 = vmatpush3.bf16.msra.mxu1 %v419_v41 }
  0x1d   :  { %394 = vmatpush3.bf16.msra.mxu0 %v391_v36  ;;  %424 = vmatprep.subr.bf16.mxu1 %v423_v45 }
  0x1e   :  { %396 = vmatprep.subr.bf16.mxu0 %v395_v42 }
  0x20   :  { %426 = vmatpush3.bf16.msra.mxu1 %v423_v45 }
  0x21   :  { %398 = vmatpush3.bf16.msra.mxu0 %v395_v42  ;;  %428 = vmatprep.subr.bf16.mxu1 %v427_v51 }
  0x24   :  { %324 = vmatmul.mubr.f32.vlgmr.msra.gmra.mrb[0].mxu0 %v22_v46  ;;  %430 = vmatpush3.bf16.msra.mxu1 %v427_v51 }
  0x25   :  { %326 = vmatprep.mubr.f32.mxu0 %v23_v47 }
  0x28   :  { %327 = vmatmul.mubr.f32.gmra.mrb[2].mxu0 %v24_v48 }
  0xf7   :  { %v325_v53 = vpop.f32.mrb[0].mxu0 }
  0xf8   :  { %v137_v54 = vadd.f32 %v325_v53, %v250_v52  ;;  %v131_v55 = vpop.f32.mrb[1].mxu0 }
  0xf9   :  { %v132_v56 = vadd.f32 %v250_v52, %v131_v55 }
  0xfa   :  { %v151_v59 = vmul.f32 %v137_v54, %v22_v46 }
  0xfb   :  { %v328_v57 = vpop.f32.mrb[2].mxu0  ;;  %v150_v58 = vmul.f32 %v132_v56, %v482_v9 }
  0xfc   :  { %v147_v60 = vadd.f32 %v328_v57, %v250_v52  ;;  %v141_v61 = vpop.f32.mrb[3].mxu0 }
  0xfd   :  { %v142_v62 = vadd.f32 %v250_v52, %v141_v61  ;;  %361 = vmatprep.mubr.f32.mxu1 %v150_v58 }
  0xfe   :  { %362 = vmatmul.mubr.f32.vlgmr.msra.gmra.mrb[0].mxu1 %v151_v59  ;;  %v153_v0 = vmul.f32 %v147_v60, %v24_v48 }
  0xff   :  { %v152_v63 = vmul.f32 %v142_v62, %v23_v47 }
 0x101   :  { %364 = vmatprep.mubr.f32.mxu1 %v152_v63 }
 0x102   :  { %365 = vmatmul.mubr.f32.gmra.mrb[2].mxu1 %v153_v0 }
 0x1d1   :  { %v363_v2 = vpop.f32.mrb[0].mxu1 }
 0x1d2   :  { %v227_v3 = vadd.f32 %v363_v2, %v154_v1  ;;  %v221_v4 = vpop.f32.mrb[1].mxu1 }
 0x1d3   :  { %v222_v5 = vadd.f32 %v221_v4, %v154_v1 }
 0x1d4   :  { %242 = vst.msk [vmem:[%s596_s5 + $0x8] sm:$0xff] %vm240_vm0, %v227_v3 }
 0x1d5   :  { %241 = vst.msk [vmem:[%s596_s5] sm:$0xff] %vm240_vm0, %v222_v5  ;;  %v366_v6 = vpop.f32.mrb[2].mxu1 }
 0x1d6   :  { %v237_v7 = vadd.f32 %v366_v6, %v154_v1  ;;  %v231_v8 = vpop.f32.mrb[3].mxu1 }
 0x1d7   :  { %v232_v9 = vadd.f32 %v231_v8, %v154_v1 }
 0x1d8   :  { %245 = vst.msk [vmem:[%s596_s5 + $0x18] sm:$0x1] %vm244_vm1, %v237_v7 }
 0x1d9   :  { %243 = vst.msk [vmem:[%s596_s5 + $0x10] sm:$0xff] %vm240_vm0, %v232_v9 }

</bundles_post_ra>
